<compile_context>
chip_gen: v6e
topology: v6e:2x2x1
jax: 0.10.0
libtpu: 0.0.40
codegen_flags: <defaults>
</compile_context>

<pallas_src>
import jax
import jax.numpy as jnp
from jax.experimental import pallas as pl
from jax.experimental.pallas import tpu as pltpu


_LANE_CANDIDATES = (512, 384, 256, 128)      # lane widths: multiples of 128 -> unmasked vst
_DEFAULT_TILE_BYTES = 4 * 1024 * 1024        # ~4 MiB per tile (largest operand)
_SMALL_THRESHOLD = 1 << 20                   # below ~1M elems, let XLA fuse the mul
_VMEM_LIMIT_BYTES = 32 * 1024 * 1024         # explicit scoped-VMEM budget (v5e/v6e/v7x safe)


def _scale_kernel(scale_ref, x_ref, o_ref):
    # scale_ref: SMEM (1,) scalar param; x_ref/o_ref: VMEM (tr, lane) tiles.
    s = scale_ref[0].astype(o_ref.dtype)
    o_ref[...] = x_ref[...].astype(o_ref.dtype) * s


def _sublane_multiple(dtype) -> int:
    # Min sublane granularity: 8 for 32-bit, 16 for 16-bit, 32 for 8-bit dtypes.
    itemsize = jnp.dtype(dtype).itemsize
    return max(8, 32 // max(itemsize, 1))


def _choose_lane(total: int):
    """Largest lane width that divides `total`; else lane-aligned main + ragged tail."""
    for lane in _LANE_CANDIDATES:
        if total % lane == 0:
            return lane, 0
    for lane in _LANE_CANDIDATES:
        if total >= lane:
            main = (total // lane) * lane
            return lane, total - main
    return 0, total  # fewer than 128 elements: everything is "tail"


def _choose_tile_rows(rows, lane, in_itemsize, out_itemsize, sublane,
                      tile_bytes, vmem_limit):
    if rows <= sublane:
        # Single block covering the full (small) row extent; "block == full dim"
        # satisfies the tiling rule even if rows isn't a multiple of `sublane`.
        return rows
    # Rows from the per-tile byte budget (largest operand).
    budget = tile_bytes // (lane * max(in_itemsize, out_itemsize))
    # Keep double-buffered input+output tiles within ~80% of the scoped limit.
    vmem_cap = (vmem_limit * 4 // 10) // (lane * (in_itemsize + out_itemsize))
    tr = min(budget, vmem_cap, rows)
    # Guarantee >= 2 (ideally >= 4) grid steps for DMA/compute overlap and so
    # v7x's two TensorCores both get work on medium tensors.
    if rows >= 4 * sublane:
        tr = min(tr, pl.cdiv(rows, 4))
    elif rows >= 2 * sublane:
        tr = min(tr, pl.cdiv(rows, 2))
    tr = max(sublane, (tr // sublane) * sublane)
    return min(tr, rows)


def _scale_pallas_2d(x2d, scale, out_dtype, tr):
    rows, lane = x2d.shape
    num_tiles = pl.cdiv(rows, tr)  # partial final block handled by Pallas masking
    return pl.pallas_call(
        _scale_kernel,
        out_shape=jax.ShapeDtypeStruct((rows, lane), out_dtype),
        grid_spec=pltpu.PrefetchScalarGridSpec(
            num_scalar_prefetch=0,
            grid=(num_tiles,),
            in_specs=[
                pl.BlockSpec(memory_space=pltpu.MemorySpace.SMEM),  # scale scalar
                pl.BlockSpec((tr, lane), lambda i: (i, 0)),          # lane-dense tile
            ],
            out_specs=pl.BlockSpec((tr, lane), lambda i: (i, 0)),
        ),
        compiler_params=pltpu.CompilerParams(
            dimension_semantics=("parallel",),
            vmem_limit_bytes=_VMEM_LIMIT_BYTES,
        ),
    )(scale, x2d)


def scale_layer(x: jax.Array, scale, *, use_pallas=None,
                tile_bytes: int = _DEFAULT_TILE_BYTES) -> jax.Array:
    """out = x * scale (scalar broadcast), matching ScaleLayer.forward."""
    # nn.Parameter(torch.FloatTensor([init_value])) -> float32 scalar param.
    scale = jnp.asarray(scale, dtype=jnp.float32).reshape((1,))
    # Match torch type promotion (e.g. bf16 input * f32 param -> f32 output).
    out_dtype = jnp.result_type(x.dtype, scale.dtype)
    total = int(x.size)

    if use_pallas is None:
        use_pallas = total >= _SMALL_THRESHOLD
    if not use_pallas or total == 0:
        # Small tensors: kernel launch + lost XLA fusion would dominate.
        return (x.astype(out_dtype) * scale[0].astype(out_dtype)).astype(out_dtype)

    flat = x.reshape(-1)
    lane, tail = _choose_lane(total)
    if lane == 0:
        # < 128 elements: not even one full lane -> plain jnp multiply.
        return (x.astype(out_dtype) * scale[0].astype(out_dtype)).astype(out_dtype)

    main = total - tail
    rows = main // lane
    main_flat = flat if tail == 0 else flat[:main]

    sublane = max(_sublane_multiple(x.dtype), _sublane_multiple(out_dtype))
    in_isz = jnp.dtype(x.dtype).itemsize
    out_isz = jnp.dtype(out_dtype).itemsize
    tr = _choose_tile_rows(rows, lane, in_isz, out_isz, sublane,
                           tile_bytes, _VMEM_LIMIT_BYTES)

    out_main = _scale_pallas_2d(main_flat.reshape(rows, lane), scale, out_dtype, tr)
    out_flat = out_main.reshape(-1)
    if tail:
        # Ragged tail (< lane elements): handled out-of-band, no full-tensor pad.
        tail_out = flat[main:].astype(out_dtype) * scale[0].astype(out_dtype)
        out_flat = jnp.concatenate([out_flat, tail_out])
    return out_flat.reshape(x.shape)


if __name__ == "__main__":
    key = jax.random.PRNGKey(0)

    # Deterministic parameter, mirroring ScaleLayer(init_value=0.5).
    scale_param = jnp.array([0.5], dtype=jnp.float32)

    # 1) Small NCHW f32 feature map (2048 elems): single lane-dense block.
    x1 = jax.random.normal(key, (2, 4, 16, 16), dtype=jnp.float32)
    ref1 = x1 * scale_param[0]
    out1 = jax.block_until_ready(scale_layer(x1, scale_param, use_pallas=True))
    assert out1.shape == x1.shape and out1.dtype == ref1.dtype
    assert jnp.allclose(out1, ref1, atol=1e-6, rtol=1e-6)

    # 2) Multi-tile parallel grid with a partial final row-block
    #    (38400 elems -> 75 rows x 512 lanes, 16-row tiles, 5 grid steps).
    x2 = jax.random.normal(jax.random.PRNGKey(0), (2, 3, 50, 128), dtype=jnp.float32)
    out2 = jax.block_until_ready(scale_layer(x2, scale_param, use_pallas=True))
    assert jnp.allclose(out2, x2 * scale_param[0], atol=1e-6, rtol=1e-6)

    # 3) Ragged element count (1155): lane-aligned main slab via the kernel,
    #    tiny jnp tail out-of-band (no full-tensor padding).
    x3 = jax.random.normal(jax.random.PRNGKey(0), (3, 5, 7, 11), dtype=jnp.float32)
    out3 = jax.block_until_ready(scale_layer(x3, scale_param, use_pallas=True))
    assert jnp.allclose(out3, x3 * scale_param[0], atol=1e-6, rtol=1e-6)

    # 4) bf16 input * f32 param -> f32 output (torch promotion), dtype-aware
    #    16-row sublane tiles, 2 grid steps.
    x4 = jax.random.normal(jax.random.PRNGKey(0), (2, 8, 32, 32), dtype=jnp.bfloat16)
    ref4 = x4.astype(jnp.float32) * scale_param[0]
    out4 = jax.block_until_ready(scale_layer(x4, scale_param, use_pallas=True))
    assert out4.dtype == jnp.float32
    assert jnp.allclose(out4, ref4, atol=1e-6, rtol=1e-6)

    # 5) Auto-dispatch path (tiny tensor -> fused jnp multiply).
    out5 = jax.block_until_ready(scale_layer(x1, scale_param))
    assert jnp.allclose(out5, ref1, atol=1e-6, rtol=1e-6)

    print("KERNEL_OK")
</pallas_src>

<mosaic_0001>
module attributes {stable_mosaic.version = 11 : i64} {
  func.func @_scale_kernel(%arg0: i32, %arg1: memref<1xf32, #tpu.memory_space<smem>>, %arg2: memref<4x512xf32, #tpu.memory_space<vmem>>, %arg3: memref<4x512xf32, #tpu.memory_space<vmem>>) attributes {dimension_semantics = [#tpu.dimension_semantics<parallel>], iteration_bounds = array<i64: 1>, scalar_prefetch = 0 : i64, scratch_operands = 0 : i64, tpu.core_type = #tpu.core_type<tc>, window_params = [{transform_indices = @transform_0, window_bounds = array<i64: 1>}, {transform_indices = @transform_1, window_bounds = array<i64: 4, 512>}, {transform_indices = @transform_2, window_bounds = array<i64: 4, 512>}]} {
    %c0 = arith.constant 0 : index
    %0 = memref.load %arg1[%c0] : memref<1xf32, #tpu.memory_space<smem>>
    %c0_0 = arith.constant 0 : index
    %c0_1 = arith.constant 0 : index
    %1 = vector.load %arg2[%c0_0, %c0_1] : memref<4x512xf32, #tpu.memory_space<vmem>>, vector<4x512xf32>
    %2 = vector.broadcast %0 : f32 to vector<4x512xf32>
    %3 = arith.mulf %1, %2 : vector<4x512xf32>
    %c0_2 = arith.constant 0 : index
    %c0_3 = arith.constant 0 : index
    %4 = vector.load %arg3[%c0_2, %c0_3] : memref<4x512xf32, #tpu.memory_space<vmem>>, vector<4x512xf32>
    tpu.vector_store %arg3[%c0_2, %c0_3], %3 {strides = array<i32>} : memref<4x512xf32, #tpu.memory_space<vmem>>, vector<4x512xf32>,
    return
  }
  func.func @transform_0(%arg0: i32) -> i32 {
    %c0_i32 = arith.constant 0 : i32
    %c0_i32_0 = arith.constant 0 : i32
    return %c0_i32 : i32
  }
  func.func @transform_1(%arg0: i32) -> (i32, i32) {
    %c0_i32 = arith.constant 0 : i32
    %c0_i32_0 = arith.constant 0 : i32
    return %arg0, %c0_i32 : i32, i32
  }
  func.func @transform_2(%arg0: i32) -> (i32, i32) {
    %c0_i32 = arith.constant 0 : i32
    %c0_i32_0 = arith.constant 0 : i32
    return %arg0, %c0_i32 : i32, i32
  }
}

</mosaic_0001>

<bundles_post_ra>
// kernel: tpu_custom_call.1
= control target key start
LH: loop header
LB: loop body
LE: loop exit
PB: predicated region body
PF: predicated region fallthrough
CT: control target
= control target key end

     0   :  { %8 = vsyncpa [#allocation4], 0  ;;  %s120_s0 = inlined_call_operand.<no memory space> [shape: f32[1], index: 0, kind: input, shape index: {}]   ;;  %s121_s1 = inlined_call_operand.hbm [shape: f32[4,512], index: 1, kind: input, shape index: {}]   ;;  %s122_s2 = inlined_call_operand.hbm [shape: f32[4,512], index: 2, kind: output, shape index: {}]  }
   0x1   :  { %9 = vsyncpa [#allocation5], 0  ;;  %s94_s9 = smov [#allocation3]  }
   0x2   :  { %s18_s10 = sshll.u32 %s94_s9, 4  ;;  %s19_s10 = int_to_ptr.vmem [resolvable:$true] %s18_s10 }
   0x3   :  { %s58_s11 = scalar_lea.vmem %s19_s10, 256  ;;  %p63_p1 = scmp.lt.s32.totalorder %s19_s10, %s19_s10 }
   0x4   :  { %p59_p0 = scmp.ne.s32.totalorder %s19_s10, %s58_s11  ;;  %p64_p2 = scmp.lt.s32.totalorder %s58_s11, %s58_s11 }
   0x6   :  { %p65_p3 = por %p64_p2, %p63_p1 }
   0x8   :  { %p66_p4 = pnand %p65_p3, %p59_p0 }
   0xa   :  { %69 = shalt.err (!%p66_p4)
}
   0xb   :  { %21 = dma.hbm_to_vmem [thread:$0]  %s121_s1, 256, %s19_s10, [#allocation4]  }
   0xc   :  { %90 = dma.done.wait [#allocation4], 256  }
   0xd   :  { %91 = vsyncadd [#allocation4], 4294967040  ;;  %v28_v0 = vstv %s120_s0  ;;  %s95_s16 = smov [#allocation6]   ;;  %v26_v1 = vld [vmem:[#allocation3] sm:$0xff]  ;;  %v27_v2 = vld [vmem:[#allocation3 + $0x8] sm:$0xff] }
   0xe   :  { %s39_s17 = sshll.u32 %s95_s16, 4  ;;  %v29_v3 = vmul.f32 %v28_v0, %v26_v1  ;;  %v30_v4 = vmul.f32 %v28_v0, %v27_v2  ;;  %s40_s17 = int_to_ptr.vmem [resolvable:$true] %s39_s17 }
   0xf   :  { %s70_s18 = scalar_lea.vmem %s40_s17, 256  ;;  %p75_p6 = scmp.lt.s32.totalorder %s40_s17, %s40_s17 }
  0x10   :  { %31 = vst [vmem:[#allocation6] sm:$0xff] %v29_v3  ;;  %32 = vst [vmem:[#allocation6 + $0x8] sm:$0xff] %v30_v4  ;;  %p71_p5 = scmp.ne.s32.totalorder %s40_s17, %s70_s18  ;;  %p76_p7 = scmp.lt.s32.totalorder %s70_s18, %s70_s18 }
  0x12   :  { %p77_p8 = por %p76_p7, %p75_p6 }
  0x14   :  { %p78_p9 = pnand %p77_p8, %p71_p5 }
  0x16   :  { %81 = shalt.err (!%p78_p9)
}
  0x17   :  { %42 = dma.vmem_to_hbm [thread:$0]  %s40_s17, 256, %s122_s2, [#allocation5]  }
  0x18   :  { %92 = dma.done.wait [#allocation5], 256  }
  0x19   :  { %93 = vsyncadd [#allocation5], 4294967040 }
  0x1a   :  { %46 = vsyncpa [#allocation4], 1 }
  0x1b   :  { %47 = vsyncpa [#allocation5], 1 }

</bundles_post_ra>
